<compile_context>
chip_gen: v5e
topology: v5e:2x2
jax: 0.10.0
libtpu: 0.0.40
codegen_flags: <defaults>
</compile_context>

<pallas_src>
import jax
import jax.numpy as jnp
from jax.experimental import pallas as pl
from jax.experimental.pallas import tpu as pltpu

LANE = 128
SUBLANE = 8


def round_up(v, m):
    return ((v + m - 1) // m) * m


def pad_to(arr, shape):
    pads = [(0, s - d) for d, s in zip(arr.shape, shape)]
    return jnp.pad(arr, pads)


def gin_kernel(a_ref, x_ref, r_ref,
               w1a_ref, b1a_ref, w1b_ref, b1b_ref,
               w2a_ref, b2a_ref, w2b_ref, b2b_ref,
               wfc_ref, bfc_ref,
               out_ref):
    # One chunk of the batch per grid step.  A' is block-diagonal over the
    # graphs in the chunk, so a single matmul aggregates all of them.
    a = a_ref[...]            # (M_PAD, M_PAD)  block-diag A' = A + I
    x = x_ref[...]            # (M_PAD, F_PAD)  stacked node features

    # ---- conv1: GINConv with 2-layer MLP (Linear -> ReLU -> Linear -> ReLU) ----
    h = jnp.dot(a, x, preferred_element_type=jnp.float32)                   # A' @ x
    h = jnp.maximum(
        jnp.dot(h, w1a_ref[...], preferred_element_type=jnp.float32) + b1a_ref[...], 0.0)
    h = jnp.maximum(
        jnp.dot(h, w1b_ref[...], preferred_element_type=jnp.float32) + b1b_ref[...], 0.0)

    # ---- conv2: GINConv with 2-layer MLP ----
    h = jnp.dot(a, h, preferred_element_type=jnp.float32)                   # A' @ h
    h = jnp.maximum(
        jnp.dot(h, w2a_ref[...], preferred_element_type=jnp.float32) + b2a_ref[...], 0.0)
    h = jnp.maximum(
        jnp.dot(h, w2b_ref[...], preferred_element_type=jnp.float32) + b2b_ref[...], 0.0)

    # ---- per-graph readout (masked node-sum as one MXU matmul) + final Linear ----
    # r[g, m] = 1.0 iff node m belongs to graph g of this chunk; padded nodes /
    # padded graph rows are zero, so junk rows never reach the readout.
    g = jnp.dot(r_ref[...], h, preferred_element_type=jnp.float32)          # (GB_PAD, H_PAD)
    out_ref[...] = (jnp.dot(g, wfc_ref[...], preferred_element_type=jnp.float32)
                    + bfc_ref[...])                                          # (GB_PAD, OUT_PAD)


def gin_forward(a, x, params):
    """a: (B, N, N) dense adjacency (A[i,j] = #edges j->i), x: (B, N, F)."""
    (w1a, b1a, w1b, b1b, w2a, b2a, w2b, b2b, wfc, bfc) = params
    B, N, F = x.shape
    H = w1a.shape[1]
    OUT = wfc.shape[1]

    # Split the batch into 2 chunks when possible so v7x's 2 TensorCores both
    # get a grid step; pack each chunk block-diagonally onto the sublane axis.
    n_chunks = 2 if (B % 2 == 0 and B >= 2) else 1
    GB = B // n_chunks                  # graphs per chunk
    M = GB * N                          # packed nodes per chunk
    M_PAD = round_up(M, SUBLANE)        # node axis: sublane pad only (not 128!)
    GB_PAD = round_up(GB, SUBLANE)
    F_PAD = round_up(F, LANE)
    H_PAD = round_up(H, LANE)
    OUT_PAD = round_up(OUT, LANE)

    # Fold the GIN self-term (eps=0) into the adjacency: A' = A + I.
    a_hat = a + jnp.eye(N, dtype=a.dtype)[None]                             # (B, N, N)

    # Block-diagonal A' per chunk: bd[c, g*N+i, h*N+j] = a_hat[c*GB+g, i, j] * delta(g, h)
    a_c = a_hat.reshape(n_chunks, GB, N, N)
    bd = jnp.einsum('cgij,gh->cgihj', a_c, jnp.eye(GB, dtype=a.dtype))
    bd = bd.reshape(n_chunks, M, M)
    a_p = pad_to(bd, (n_chunks, M_PAD, M_PAD))

    x_p = pad_to(x.reshape(n_chunks, M, F), (n_chunks, M_PAD, F_PAD))

    # Readout selector (shared by all chunks): row g sums the nodes of graph g.
    node_graph = jnp.repeat(jnp.arange(GB), N)                              # (M,)
    r = jnp.zeros((GB_PAD, M_PAD), jnp.float32).at[node_graph, jnp.arange(M)].set(1.0)

    w1a_p, b1a_p = pad_to(w1a, (F_PAD, H_PAD)), pad_to(b1a, (1, H_PAD))
    w1b_p, b1b_p = pad_to(w1b, (H_PAD, H_PAD)), pad_to(b1b, (1, H_PAD))
    w2a_p, b2a_p = pad_to(w2a, (H_PAD, H_PAD)), pad_to(b2a, (1, H_PAD))
    w2b_p, b2b_p = pad_to(w2b, (H_PAD, H_PAD)), pad_to(b2b, (1, H_PAD))
    wfc_p, bfc_p = pad_to(wfc, (H_PAD, OUT_PAD)), pad_to(bfc, (1, OUT_PAD))

    chunk3 = lambda c: (c, 0, 0)     # per-chunk block
    fixed2 = lambda c: (0, 0)        # shared (weights / biases / readout selector)

    out = pl.pallas_call(
        gin_kernel,
        out_shape=jax.ShapeDtypeStruct((n_chunks, GB_PAD, OUT_PAD), jnp.float32),
        grid=(n_chunks,),
        in_specs=[
            pl.BlockSpec((None, M_PAD, M_PAD), chunk3),    # block-diag A'
            pl.BlockSpec((None, M_PAD, F_PAD), chunk3),    # stacked x
            pl.BlockSpec((GB_PAD, M_PAD), fixed2),         # readout selector
            pl.BlockSpec((F_PAD, H_PAD), fixed2),          # w1a
            pl.BlockSpec((1, H_PAD), fixed2),              # b1a
            pl.BlockSpec((H_PAD, H_PAD), fixed2),          # w1b
            pl.BlockSpec((1, H_PAD), fixed2),              # b1b
            pl.BlockSpec((H_PAD, H_PAD), fixed2),          # w2a
            pl.BlockSpec((1, H_PAD), fixed2),              # b2a
            pl.BlockSpec((H_PAD, H_PAD), fixed2),          # w2b
            pl.BlockSpec((1, H_PAD), fixed2),              # b2b
            pl.BlockSpec((H_PAD, OUT_PAD), fixed2),        # wfc
            pl.BlockSpec((1, OUT_PAD), fixed2),            # bfc
        ],
        out_specs=pl.BlockSpec((None, GB_PAD, OUT_PAD), chunk3),
        compiler_params=pltpu.CompilerParams(
            dimension_semantics=("parallel",)),
    )(a_p, x_p, r,
      w1a_p, b1a_p, w1b_p, b1b_p,
      w2a_p, b2a_p, w2b_p, b2b_p,
      wfc_p, bfc_p)

    # (n_chunks, GB, OUT) -> (B, OUT), graph order preserved (c * GB + g).
    return out[:, :GB, :OUT].reshape(B, OUT)


def init_linear(key, in_dim, out_dim):
    # Deterministic synthetic init (PyTorch-like uniform bound), stored as (in, out).
    kw, kb = jax.random.split(key)
    bound = 1.0 / jnp.sqrt(in_dim)
    w = jax.random.uniform(kw, (in_dim, out_dim), jnp.float32, -bound, bound)
    b = jax.random.uniform(kb, (1, out_dim), jnp.float32, -bound, bound)
    return w, b


def reference_forward(a, x, params):
    # Pure-JAX reference of the original (single-graph) module math.
    (w1a, b1a, w1b, b1b, w2a, b2a, w2b, b2b, wfc, bfc) = params
    h = x + a @ x
    h = jnp.maximum(h @ w1a + b1a, 0.0)
    h = jnp.maximum(h @ w1b + b1b, 0.0)
    h = h + a @ h
    h = jnp.maximum(h @ w2a + b2a, 0.0)
    h = jnp.maximum(h @ w2b + b2b, 0.0)
    g = jnp.sum(h, axis=0, keepdims=True)
    return (g @ wfc + bfc)[0]


if __name__ == "__main__":
    key = jax.random.PRNGKey(0)
    k_x, k_e, k1, k2, k3, k4, k5 = jax.random.split(key, 7)

    # Small batch of small graphs.
    batch = 4
    num_nodes = 16
    input_dim = 8
    hidden_dim = 32
    output_dim = 8
    num_edges = 48

    x = jax.random.normal(k_x, (batch, num_nodes, input_dim), jnp.float32)
    edge_index = jax.random.randint(k_e, (batch, 2, num_edges), 0, num_nodes)  # [B, 2, E]

    # Dense adjacency per graph: A[i, j] = #edges j -> i  (A @ x == scatter_add of x[src] at dst).
    def dense_adj(ei):
        src, dst = ei[0], ei[1]
        return jnp.zeros((num_nodes, num_nodes), jnp.float32).at[dst, src].add(1.0)
    a = jax.vmap(dense_adj)(edge_index)                                     # (B, N, N)

    # Parameters (deterministic synthetic init).
    w1a, b1a = init_linear(k1, input_dim, hidden_dim)
    w1b, b1b = init_linear(k2, hidden_dim, hidden_dim)
    w2a, b2a = init_linear(k3, hidden_dim, hidden_dim)
    w2b, b2b = init_linear(k4, hidden_dim, hidden_dim)
    wfc, bfc = init_linear(k5, hidden_dim, output_dim)
    params = (w1a, b1a, w1b, b1b, w2a, b2a, w2b, b2b, wfc, bfc)

    out = gin_forward(a, x, params)
    out = jax.block_until_ready(out)
    assert out.shape == (batch, output_dim)

    for b in range(batch):
        ref = reference_forward(a[b], x[b], params)
        assert jnp.allclose(out[b], ref, atol=1e-4, rtol=1e-4), (b, out[b], ref)

    print("KERNEL_OK")
</pallas_src>

<mosaic_0001>
module attributes {stable_mosaic.version = 11 : i64} {
  func.func @gin_kernel(%arg0: i32, %arg1: memref<1x32x32xf32, #tpu.memory_space<vmem>>, %arg2: memref<1x32x128xf32, #tpu.memory_space<vmem>>, %arg3: memref<8x32xf32, #tpu.memory_space<vmem>>, %arg4: memref<128x128xf32, #tpu.memory_space<vmem>>, %arg5: memref<1x128xf32, #tpu.memory_space<vmem>>, %arg6: memref<128x128xf32, #tpu.memory_space<vmem>>, %arg7: memref<1x128xf32, #tpu.memory_space<vmem>>, %arg8: memref<128x128xf32, #tpu.memory_space<vmem>>, %arg9: memref<1x128xf32, #tpu.memory_space<vmem>>, %arg10: memref<128x128xf32, #tpu.memory_space<vmem>>, %arg11: memref<1x128xf32, #tpu.memory_space<vmem>>, %arg12: memref<128x128xf32, #tpu.memory_space<vmem>>, %arg13: memref<1x128xf32, #tpu.memory_space<vmem>>, %arg14: memref<1x8x128xf32, #tpu.memory_space<vmem>>) attributes {dimension_semantics = [#tpu.dimension_semantics<parallel>], iteration_bounds = array<i64: 2>, scalar_prefetch = 0 : i64, scratch_operands = 0 : i64, tpu.core_type = #tpu.core_type<tc>, window_params = [{transform_indices = @transform_0, window_bounds = array<i64: 1, 32, 32>}, {transform_indices = @transform_1, window_bounds = array<i64: 1, 32, 128>}, {pipeline_mode = #tpu.pipeline_mode<synchronous>, transform_indices = @transform_2, window_bounds = array<i64: 8, 32>}, {pipeline_mode = #tpu.pipeline_mode<synchronous>, transform_indices = @transform_3, window_bounds = array<i64: 128, 128>}, {pipeline_mode = #tpu.pipeline_mode<synchronous>, transform_indices = @transform_4, window_bounds = array<i64: 1, 128>}, {pipeline_mode = #tpu.pipeline_mode<synchronous>, transform_indices = @transform_5, window_bounds = array<i64: 128, 128>}, {pipeline_mode = #tpu.pipeline_mode<synchronous>, transform_indices = @transform_6, window_bounds = array<i64: 1, 128>}, {pipeline_mode = #tpu.pipeline_mode<synchronous>, transform_indices = @transform_7, window_bounds = array<i64: 128, 128>}, {pipeline_mode = #tpu.pipeline_mode<synchronous>, transform_indices = @transform_8, window_bounds = array<i64: 1, 128>}, {pipeline_mode = #tpu.pipeline_mode<synchronous>, transform_indices = @transform_9, window_bounds = array<i64: 128, 128>}, {pipeline_mode = #tpu.pipeline_mode<synchronous>, transform_indices = @transform_10, window_bounds = array<i64: 1, 128>}, {pipeline_mode = #tpu.pipeline_mode<synchronous>, transform_indices = @transform_11, window_bounds = array<i64: 128, 128>}, {pipeline_mode = #tpu.pipeline_mode<synchronous>, transform_indices = @transform_12, window_bounds = array<i64: 1, 128>}, {transform_indices = @transform_13, window_bounds = array<i64: 1, 8, 128>}]} {
    %c0 = arith.constant 0 : index
    %c0_0 = arith.constant 0 : index
    %c0_1 = arith.constant 0 : index
    %0 = vector.load %arg1[%c0, %c0_0, %c0_1] : memref<1x32x32xf32, #tpu.memory_space<vmem>>, vector<1x32x32xf32>
    %1 = vector.shape_cast %0 : vector<1x32x32xf32> to vector<32x32xf32>
    %c0_2 = arith.constant 0 : index
    %c0_3 = arith.constant 0 : index
    %c0_4 = arith.constant 0 : index
    %2 = vector.load %arg2[%c0_2, %c0_3, %c0_4] : memref<1x32x128xf32, #tpu.memory_space<vmem>>, vector<1x32x128xf32>
    %3 = vector.shape_cast %2 : vector<1x32x128xf32> to vector<32x128xf32>
    %cst = arith.constant dense<0.000000e+00> : vector<32x128xf32>
    %4 = tpu.matmul %1, %3, %cst {dimension_numbers = #tpu.dot_dimension_numbers<[1], [0], [0], [1], [0, 0, 1, 1], [], []>} : vector<32x32xf32>, vector<32x128xf32>, vector<32x128xf32> -> vector<32x128xf32>
    %c0_5 = arith.constant 0 : index
    %c0_6 = arith.constant 0 : index
    %5 = vector.load %arg4[%c0_5, %c0_6] : memref<128x128xf32, #tpu.memory_space<vmem>>, vector<128x128xf32>
    %cst_7 = arith.constant dense<0.000000e+00> : vector<32x128xf32>
    %6 = tpu.matmul %4, %5, %cst_7 {dimension_numbers = #tpu.dot_dimension_numbers<[1], [0], [0], [1], [0, 0, 1, 1], [], []>} : vector<32x128xf32>, vector<128x128xf32>, vector<32x128xf32> -> vector<32x128xf32>
    %c0_8 = arith.constant 0 : index
    %c0_9 = arith.constant 0 : index
    %7 = vector.load %arg5[%c0_8, %c0_9] : memref<1x128xf32, #tpu.memory_space<vmem>>, vector<1x128xf32>
    %8 = vector.broadcast %7 : vector<1x128xf32> to vector<32x128xf32>
    %9 = arith.addf %6, %8 : vector<32x128xf32>
    %cst_10 = arith.constant 0.000000e+00 : f32
    %10 = vector.broadcast %cst_10 : f32 to vector<32x128xf32>
    %11 = arith.maximumf %9, %10 : vector<32x128xf32>
    %c0_11 = arith.constant 0 : index
    %c0_12 = arith.constant 0 : index
    %12 = vector.load %arg6[%c0_11, %c0_12] : memref<128x128xf32, #tpu.memory_space<vmem>>, vector<128x128xf32>
    %cst_13 = arith.constant dense<0.000000e+00> : vector<32x128xf32>
    %13 = tpu.matmul %11, %12, %cst_13 {dimension_numbers = #tpu.dot_dimension_numbers<[1], [0], [0], [1], [0, 0, 1, 1], [], []>} : vector<32x128xf32>, vector<128x128xf32>, vector<32x128xf32> -> vector<32x128xf32>
    %c0_14 = arith.constant 0 : index
    %c0_15 = arith.constant 0 : index
    %14 = vector.load %arg7[%c0_14, %c0_15] : memref<1x128xf32, #tpu.memory_space<vmem>>, vector<1x128xf32>
    %15 = vector.broadcast %14 : vector<1x128xf32> to vector<32x128xf32>
    %16 = arith.addf %13, %15 : vector<32x128xf32>
    %cst_16 = arith.constant 0.000000e+00 : f32
    %17 = vector.broadcast %cst_16 : f32 to vector<32x128xf32>
    %18 = arith.maximumf %16, %17 : vector<32x128xf32>
    %cst_17 = arith.constant dense<0.000000e+00> : vector<32x128xf32>
    %19 = tpu.matmul %1, %18, %cst_17 {dimension_numbers = #tpu.dot_dimension_numbers<[1], [0], [0], [1], [0, 0, 1, 1], [], []>} : vector<32x32xf32>, vector<32x128xf32>, vector<32x128xf32> -> vector<32x128xf32>
    %c0_18 = arith.constant 0 : index
    %c0_19 = arith.constant 0 : index
    %20 = vector.load %arg8[%c0_18, %c0_19] : memref<128x128xf32, #tpu.memory_space<vmem>>, vector<128x128xf32>
    %cst_20 = arith.constant dense<0.000000e+00> : vector<32x128xf32>
    %21 = tpu.matmul %19, %20, %cst_20 {dimension_numbers = #tpu.dot_dimension_numbers<[1], [0], [0], [1], [0, 0, 1, 1], [], []>} : vector<32x128xf32>, vector<128x128xf32>, vector<32x128xf32> -> vector<32x128xf32>
    %c0_21 = arith.constant 0 : index
    %c0_22 = arith.constant 0 : index
    %22 = vector.load %arg9[%c0_21, %c0_22] : memref<1x128xf32, #tpu.memory_space<vmem>>, vector<1x128xf32>
    %23 = vector.broadcast %22 : vector<1x128xf32> to vector<32x128xf32>
    %24 = arith.addf %21, %23 : vector<32x128xf32>
    %cst_23 = arith.constant 0.000000e+00 : f32
    %25 = vector.broadcast %cst_23 : f32 to vector<32x128xf32>
    %26 = arith.maximumf %24, %25 : vector<32x128xf32>
    %c0_24 = arith.constant 0 : index
    %c0_25 = arith.constant 0 : index
    %27 = vector.load %arg10[%c0_24, %c0_25] : memref<128x128xf32, #tpu.memory_space<vmem>>, vector<128x128xf32>
    %cst_26 = arith.constant dense<0.000000e+00> : vector<32x128xf32>
    %28 = tpu.matmul %26, %27, %cst_26 {dimension_numbers = #tpu.dot_dimension_numbers<[1], [0], [0], [1], [0, 0, 1, 1], [], []>} : vector<32x128xf32>, vector<128x128xf32>, vector<32x128xf32> -> vector<32x128xf32>
    %c0_27 = arith.constant 0 : index
    %c0_28 = arith.constant 0 : index
    %29 = vector.load %arg11[%c0_27, %c0_28] : memref<1x128xf32, #tpu.memory_space<vmem>>, vector<1x128xf32>
    %30 = vector.broadcast %29 : vector<1x128xf32> to vector<32x128xf32>
    %31 = arith.addf %28, %30 : vector<32x128xf32>
    %cst_29 = arith.constant 0.000000e+00 : f32
    %32 = vector.broadcast %cst_29 : f32 to vector<32x128xf32>
    %33 = arith.maximumf %31, %32 : vector<32x128xf32>
    %c0_30 = arith.constant 0 : index
    %c0_31 = arith.constant 0 : index
    %34 = vector.load %arg3[%c0_30, %c0_31] : memref<8x32xf32, #tpu.memory_space<vmem>>, vector<8x32xf32>
    %cst_32 = arith.constant dense<0.000000e+00> : vector<8x128xf32>
    %35 = tpu.matmul %34, %33, %cst_32 {dimension_numbers = #tpu.dot_dimension_numbers<[1], [0], [0], [1], [0, 0, 1, 1], [], []>} : vector<8x32xf32>, vector<32x128xf32>, vector<8x128xf32> -> vector<8x128xf32>
    %c0_33 = arith.constant 0 : index
    %c0_34 = arith.constant 0 : index
    %36 = vector.load %arg12[%c0_33, %c0_34] : memref<128x128xf32, #tpu.memory_space<vmem>>, vector<128x128xf32>
    %cst_35 = arith.constant dense<0.000000e+00> : vector<8x128xf32>
    %37 = tpu.matmul %35, %36, %cst_35 {dimension_numbers = #tpu.dot_dimension_numbers<[1], [0], [0], [1], [0, 0, 1, 1], [], []>} : vector<8x128xf32>, vector<128x128xf32>, vector<8x128xf32> -> vector<8x128xf32>
    %c0_36 = arith.constant 0 : index
    %c0_37 = arith.constant 0 : index
    %38 = vector.load %arg13[%c0_36, %c0_37] : memref<1x128xf32, #tpu.memory_space<vmem>>, vector<1x128xf32>
    %39 = vector.broadcast %38 : vector<1x128xf32> to vector<8x128xf32>
    %40 = arith.addf %37, %39 : vector<8x128xf32>
    %c0_38 = arith.constant 0 : index
    %c0_39 = arith.constant 0 : index
    %c0_40 = arith.constant 0 : index
    %41 = vector.load %arg14[%c0_38, %c0_39, %c0_40] : memref<1x8x128xf32, #tpu.memory_space<vmem>>, vector<1x8x128xf32>
    %42 = vector.shape_cast %41 : vector<1x8x128xf32> to vector<8x128xf32>
    %43 = vector.shape_cast %40 : vector<8x128xf32> to vector<1x8x128xf32>
    tpu.vector_store %arg14[%c0_38, %c0_39, %c0_40], %43 {strides = array<i32>} : memref<1x8x128xf32, #tpu.memory_space<vmem>>, vector<1x8x128xf32>,
    return
  }
  func.func @transform_0(%arg0: i32) -> (i32, i32, i32) {
    %c0_i32 = arith.constant 0 : i32
    %c0_i32_0 = arith.constant 0 : i32
    %c0_i32_1 = arith.constant 0 : i32
    return %arg0, %c0_i32, %c0_i32_0 : i32, i32, i32
  }
  func.func @transform_1(%arg0: i32) -> (i32, i32, i32) {
    %c0_i32 = arith.constant 0 : i32
    %c0_i32_0 = arith.constant 0 : i32
    %c0_i32_1 = arith.constant 0 : i32
    return %arg0, %c0_i32, %c0_i32_0 : i32, i32, i32
  }
  func.func @transform_2(%arg0: i32) -> (i32, i32) {
    %c0_i32 = arith.constant 0 : i32
    %c0_i32_0 = arith.constant 0 : i32
    %c0_i32_1 = arith.constant 0 : i32
    return %c0_i32, %c0_i32_0 : i32, i32
  }
  func.func @transform_3(%arg0: i32) -> (i32, i32) {
    %c0_i32 = arith.constant 0 : i32
    %c0_i32_0 = arith.constant 0 : i32
    %c0_i32_1 = arith.constant 0 : i32
    return %c0_i32, %c0_i32_0 : i32, i32
  }
  func.func @transform_4(%arg0: i32) -> (i32, i32) {
    %c0_i32 = arith.constant 0 : i32
    %c0_i32_0 = arith.constant 0 : i32
    %c0_i32_1 = arith.constant 0 : i32
    return %c0_i32, %c0_i32_0 : i32, i32
  }
  func.func @transform_5(%arg0: i32) -> (i32, i32) {
    %c0_i32 = arith.constant 0 : i32
    %c0_i32_0 = arith.constant 0 : i32
    %c0_i32_1 = arith.constant 0 : i32
    return %c0_i32, %c0_i32_0 : i32, i32
  }
  func.func @transform_6(%arg0: i32) -> (i32, i32) {
    %c0_i32 = arith.constant 0 : i32
    %c0_i32_0 = arith.constant 0 : i32
    %c0_i32_1 = arith.constant 0 : i32
    return %c0_i32, %c0_i32_0 : i32, i32
  }
  func.func @transform_7(%arg0: i32) -> (i32, i32) {
    %c0_i32 = arith.constant 0 : i32
    %c0_i32_0 = arith.constant 0 : i32
    %c0_i32_1 = arith.constant 0 : i32
    return %c0_i32, %c0_i32_0 : i32, i32
  }
  func.func @transform_8(%arg0: i32) -> (i32, i32) {
    %c0_i32 = arith.constant 0 : i32
    %c0_i32_0 = arith.constant 0 : i32
    %c0_i32_1 = arith.constant 0 : i32
    return %c0_i32, %c0_i32_0 : i32, i32
  }
  func.func @transform_9(%arg0: i32) -> (i32, i32) {
    %c0_i32 = arith.constant 0 : i32
    %c0_i32_0 = arith.constant 0 : i32
    %c0_i32_1 = arith.constant 0 : i32
    return %c0_i32, %c0_i32_0 : i32, i32
  }
  func.func @transform_10(%arg0: i32) -> (i32, i32) {
    %c0_i32 = arith.constant 0 : i32
    %c0_i32_0 = arith.constant 0 : i32
    %c0_i32_1 = arith.constant 0 : i32
    return %c0_i32, %c0_i32_0 : i32, i32
  }
  func.func @transform_11(%arg0: i32) -> (i32, i32) {
    %c0_i32 = arith.constant 0 : i32
    %c0_i32_0 = arith.constant 0 : i32
    %c0_i32_1 = arith.constant 0 : i32
    return %c0_i32, %c0_i32_0 : i32, i32
  }
  func.func @transform_12(%arg0: i32) -> (i32, i32) {
    %c0_i32 = arith.constant 0 : i32
    %c0_i32_0 = arith.constant 0 : i32
    %c0_i32_1 = arith.constant 0 : i32
    return %c0_i32, %c0_i32_0 : i32, i32
  }
  func.func @transform_13(%arg0: i32) -> (i32, i32, i32) {
    %c0_i32 = arith.constant 0 : i32
    %c0_i32_0 = arith.constant 0 : i32
    %c0_i32_1 = arith.constant 0 : i32
    return %arg0, %c0_i32, %c0_i32_0 : i32, i32, i32
  }
}

</mosaic_0001>

<bundles_post_ra>
// kernel: tpu_custom_call.1
= control target key start
LH: loop header
LB: loop body
LE: loop exit
PB: predicated region body
PF: predicated region fallthrough
CT: control target
= control target key end

     0   :  { %s1967_s0 = inlined_call_operand.hbm [shape: f32[2,32,32], index: 0, kind: input, shape index: {}]   ;;  %s1968_s1 = inlined_call_operand.hbm [shape: f32[2,32,128], index: 1, kind: input, shape index: {}]   ;;  %s1969_s2 = inlined_call_operand.hbm [shape: f32[8,32], index: 2, kind: input, shape index: {}]   ;;  %s1970_s3 = inlined_call_operand.hbm [shape: f32[128,128], index: 3, kind: input, shape index: {}]   ;;  %s1971_s4 = inlined_call_operand.vmem [shape: f32[1,128], index: 4, kind: input, shape index: {}]   ;;  %s1972_s5 = inlined_call_operand.hbm [shape: f32[128,128], index: 5, kind: input, shape index: {}]   ;;  %s1973_s6 = inlined_call_operand.vmem [shape: f32[1,128], index: 6, kind: input, shape index: {}]   ;;  %s1974_s7 = inlined_call_operand.hbm [shape: f32[128,128], index: 7, kind: input, shape index: {}]   ;;  %s1975_s8 = inlined_call_operand.vmem [shape: f32[1,128], index: 8, kind: input, shape index: {}]   ;;  %s1976_s9 = inlined_call_operand.hbm [shape: f32[128,128], index: 9, kind: input, shape index: {}]   ;;  %s1977_s10 = inlined_call_operand.vmem [shape: f32[1,128], index: 10, kind: input, shape index: {}]   ;;  %s1978_s11 = inlined_call_operand.hbm [shape: f32[128,128], index: 11, kind: input, shape index: {}]   ;;  %s1979_s12 = inlined_call_operand.vmem [shape: f32[1,128], index: 12, kind: input, shape index: {}]   ;;  %s1980_s13 = inlined_call_operand.hbm [shape: f32[2,8,128], index: 13, kind: output, shape index: {}]  }
   0x1   :  { %1989 = sst [smem:[#allocation28_spill]] %s1967_s0 }
   0x2   :  { %1990 = sst [smem:[#allocation29_spill]] %s1969_s2 }
   0x3   :  { %1991 = sst [smem:[#allocation30_spill]] %s1970_s3 }
   0x4   :  { %1992 = sst [smem:[#allocation31_spill]] %s1972_s5 }
   0x5   :  { %1993 = sst [smem:[#allocation32_spill]] %s1974_s7 }
   0x6   :  { %1994 = sst [smem:[#allocation33_spill]] %s1976_s9 }
   0x7   :  { %1995 = sst [smem:[#allocation34_spill]] %s1978_s11 }
   0x8   :  { %1996 = sst [smem:[#allocation35_spill]] %s1979_s12 }
   0x9   :  { %18 = vsyncpa [#allocation3], 0 }
   0xa   :  { %20 = vsyncpa [#allocation3 + $0x1], 0 }
   0xb   :  { %21 = vsyncpa [#allocation6], 0 }
   0xc   :  { %23 = vsyncpa [#allocation6 + $0x1], 0 }
   0xd   :  { %24 = vsyncpa [#allocation9], 0 }
   0xe   :  { %25 = vsyncpa [#allocation12], 0 }
   0xf   :  { %26 = vsyncpa [#allocation15], 0 }
  0x10   :  { %27 = vsyncpa [#allocation4], 0 }
  0x11   :  { %29 = vsyncpa [#allocation4 + $0x1], 0  ;;  %s1687_s25 = smov 0   ;;  %s1689_s26 = smov 0  }
  0x12   :  { %s1691_s27 = smov 0   ;;  %s1693_s28 = smov 0  }
  0x13 LB: > { %1997 = sst [smem:[#allocation24_spill]] %s1603_s27  ;;  %s1711_s15 = sadd.s32 4294967295, %s1607_s28   ;;  %s1607_s28 = sphi %s1693_s28, %s2020_s28   ;;  %s1603_s27 = sphi %s1691_s27, %s2022_s27   ;;  %s1599_s26 = sphi %s1689_s26, %s2024_s26   ;;  %s1595_s25 = sphi %s1687_s25, %s2023_s25  }
  0x14   : > { %s1998_s2 = sld [smem:[#allocation29_spill]]  ;;  %p1123_p0 = scmp.ge.s32.totalorder %s1607_s28, 1 }
  0x15   : > { %p56_p1 = scmp.eq.s32.totalorder %s1711_s15, 0  ;;  %p349_p2 = scmp.lt.s32.totalorder %s1607_s28, 3 }
  0x16   : > { %s1609_s17 = smov [#allocation7]   ;;  %s2000_s3 = sld [smem:[#allocation30_spill]] }
  0x17   : > { %p1716_p3 = pnand %p1123_p0, %p349_p2  ;;  %s363_s18 = sshll.u32 %s1609_s17, 4  ;;  %s364_s18 = int_to_ptr.vmem [resolvable:$true] %s363_s18 }
  0x18   : > { %s1610_s23 = smov [#allocation8]   ;;  %s1981_s29 = smov 128  }
  0x19   : > { %p1192_p5 = pneg %p1716_p3  ;;  %s374_s24 = sshll.u32 %s1610_s23, 4  ;;  %s375_s24 = int_to_ptr.vmem [resolvable:$true] %s374_s24 }
  0x1a   : > { %s361_s14 = sshll.u32 %s1998_s2, 4  ;;  %s1983_s30 = smov 8   ;;  %s362_s14 = int_to_ptr.hbm [resolvable:$true] %s361_s14 }
  0x1b   : > { %p1728_p6 = pnand %p1192_p5, %p56_p1  ;;  %s2002_s7 = sld [smem:[#allocation32_spill]] }
  0x1c   : > { %s372_s21 = sshll.u32 %s2000_s3, 4  ;;  %s1613_s2 = smov [#allocation11]   ;;  %s373_s21 = int_to_ptr.hbm [resolvable:$true] %s372_s21 }
  0x1d   : > { %1195 = dma.hbm_to_vmem [thread:$0]  (!%p1728_p6), %s362_s14, 128, %s364_s18, [#allocation6]  }
  0x1e   : > { %1198 = dma.hbm_to_vmem [thread:$0]  (!%p1728_p6), %s373_s21, 2048, %s375_s24, [#allocation9], %s1981_s29, %s1981_s29, %s1983_s30  }
  0x1f   : > { %s408_s3 = sshll.u32 %s1613_s2, 4  ;;  %s2003_s5 = sld [smem:[#allocation31_spill]]  ;;  %s409_s3 = int_to_ptr.vmem [resolvable:$true] %s408_s3 }
  0x20   : > { %s1614_s18 = smov [#allocation10]   ;;  %s2004_s9 = sld [smem:[#allocation33_spill]] }
  0x21   : > { %s406_s20 = sshll.u32 %s2002_s7, 4  ;;  %s391_s21 = sshll.u32 %s1614_s18, 4  ;;  %s407_s20 = int_to_ptr.hbm [resolvable:$true] %s406_s20  ;;  %s392_s21 = int_to_ptr.vmem [resolvable:$true] %s391_s21 }
  0x22   : > { %1204 = dma.hbm_to_vmem [thread:$0]  (!%p1728_p6), %s407_s20, 2048, %s409_s3, [#allocation12], %s1981_s29, %s1981_s29, %s1983_s30  }
  0x23   : > { %s2005_s11 = sld [smem:[#allocation34_spill]]  ;;  %s1615_s20 = smov [#allocation13]  }
  0x24   : > { %s425_s23 = sshll.u32 %s1615_s20, 4  ;;  %s1773_s24 = sadd.s32 1, %s1607_s28   ;;  %s426_s23 = int_to_ptr.vmem [resolvable:$true] %s425_s23 }
  0x25   : > { %s389_s14 = sshll.u32 %s2003_s5, 4  ;;  %2006 = sst [smem:[#allocation25_spill]] %s1773_s24  ;;  %s390_s14 = int_to_ptr.hbm [resolvable:$true] %s389_s14 }
  0x26   : > { %s423_s2 = sshll.u32 %s2004_s9, 4  ;;  %s39_s17 = ssub.s32 %s1607_s28, %s1773_s24  ;;  %s424_s2 = int_to_ptr.hbm [resolvable:$true] %s423_s2 }
  0x27   : > { %1201 = dma.hbm_to_vmem [thread:$0]  (!%p1728_p6), %s390_s14, 2048, %s392_s21, [#allocation9], %s1981_s29, %s1981_s29, %s1983_s30  }
  0x28   : > { %1207 = dma.hbm_to_vmem [thread:$0]  (!%p1728_p6), %s424_s2, 2048, %s426_s23, [#allocation12], %s1981_s29, %s1981_s29, %s1983_s30  }
  0x29   : > { %s440_s19 = sshll.u32 %s2005_s11, 4  ;;  %s1616_s14 = smov [#allocation14]   ;;  %s441_s19 = int_to_ptr.hbm [resolvable:$true] %s440_s19 }
  0x2a   : > { %s442_s18 = sshll.u32 %s1616_s14, 4  ;;  %s1122_s21 = sadd.s32 4294967294, %s1607_s28   ;;  %s443_s18 = int_to_ptr.vmem [resolvable:$true] %s442_s18 }
  0x2b   : > { %1210 = dma.hbm_to_vmem [thread:$0]  (!%p1728_p6), %s441_s19, 2048, %s443_s18, [#allocation15], %s1981_s29, %s1981_s29, %s1983_s30  }
  0x2c   : > { %s42_s3 = sadd.s32 1, %s1603_s27  ;;  %p40_p7 = scmp.eq.s32.totalorder %s39_s17, 0 }
  0x2d   : > { %p49_p8 = scmp.ne.s32.totalorder %s1603_s27, %s1599_s26  ;;  %p50_p9 = scmp.eq.s32.totalorder %s1607_s28, 0 }
  0x2e   : > { %p55_p10 = scmp.ne.s32.totalorder %s1599_s26, %s1595_s25  ;;  %p336_p13 = scmp.eq.s32.totalorder %s1711_s15, 1 }
  0x2f   : > { %s1784_s2 = scalar_select %p40_p7, %s1603_s27, %s42_s3  }
  0x30   : > { %p1786_p11 = por %p50_p9, %p49_p8  ;;  %p1792_p12 = por %p56_p1, %p55_p10 }
  0x31   : > { %2007 = sst [smem:[#allocation26_spill]] %s1784_s2  ;;  %p342_p0 = scmp.eq.s32.totalorder %s1122_s21, 1 }
  0x32   : > { %p1228_p2 = scmp.lt.s32.totalorder %s1607_s28, 2  ;;  %s459_s19 = sand.u32 1, %s1603_s27  }
  0x33   : > { %p1799_p5 = por %p336_p13, %p49_p8  ;;  %p1803_p6 = por %p342_p0, %p55_p10 }
  0x34   : > { %s1807_s14 = sshll.u32 %s459_s19, 5  ;;  %s1160_s18 = sshll.u32 %s1607_s28, 5 }
  0x35   : > { %s2011_s23 = scalar_select %p1803_p6, 1, 0 }
  0x36   : > { %s2013_s0 = sld [smem:[#allocation28_spill]]  ;;  %s463_s30 = scalar_lea.vmem [#allocation2], %s1807_s14 }
  0x37   : > { %2012 = sst [smem:[#allocation27_spill]] %s2011_s23  ;;  %s471_s21 = sshll.u32 %s463_s30, 4  ;;  %s472_s21 = int_to_ptr.vmem [resolvable:$true] %s471_s21 }
  0x38   : > { %p1816_p7 = pnand %p1228_p2, %p1786_p11  ;;  %s490_s2 = scalar_lea.hbm %s1968_s1, %s1160_s18 }
  0x39   : > { %s491_s27 = sshll.u32 %s490_s2, 4  ;;  %s460_s24 = scalar_lea.sflag [#allocation3], %s459_s19  ;;  %s492_s27 = int_to_ptr.hbm [resolvable:$true] %s491_s27 }
  0x3a   : > { %p1465_p9 = pneg %p1816_p7 }
  0x3c   : > { %s468_s29 = scalar_lea.hbm %s2013_s0, %s1160_s18  ;;  %s1468_s22 = scalar_lea.hbm %s2013_s0, 64 }
  0x3d   : > { %s469_s5 = sshll.u32 %s468_s29, 4  ;;  %s470_s5 = int_to_ptr.hbm [resolvable:$true] %s469_s5 }
  0x3e   : > { %s1461_s17 = sshra.s32 %s470_s5, 4  ;;  %s1462_s17 = int_to_ptr.hbm [resolvable:$true] %s1461_s17 }
  0x3f   : > { %s1463_s3 = scalar_lea.hbm %s1462_s17, 32  ;;  %p1469_p13 = scmp.lt.s32.totalorder %s1462_s17, %s2013_s0 }
  0x40   : > { %p1464_p8 = scmp.ne.s32.totalorder %s1462_s17, %s1463_s3  ;;  %p1470_p0 = scmp.lt.s32.totalorder %s1468_s22, %s1463_s3 }
  0x42   : > { %p1466_p10 = pnand %p1465_p9, %p1464_p8  ;;  %p1471_p2 = por %p1470_p0, %p1469_p13 }
  0x44   : > { %p1467_p11 = pneg %p1466_p10 }
  0x46   : > { %p1472_p4 = pnand %p1471_p2, %p1467_p11 }
  0x48   : > { %1475 = shalt.err (!%p1472_p4)
}
  0x49   : > { %s2015_s2 = smov 8   ;;  %s2016_s19 = smov 128  }
  0x4a   : > { %1214 = dma.hbm_to_vmem [thread:$0]  (!%p1816_p7), %s470_s5, 512, %s472_s21, %s460_s24, %s2016_s19, %s2016_s19, %s2015_s2  }
  0x4b   : > { %s485_s18 = scalar_lea.vmem [#allocation5], %s1807_s14  ;;  %s481_s30 = sand.u32 1, %s1607_s28  }
  0x4c   : > { %s493_s29 = sshll.u32 %s485_s18, 4  ;;  %s482_s9 = scalar_lea.sflag [#allocation6], %s481_s30  ;;  %s494_s29 = int_to_ptr.vmem [resolvable:$true] %s493_s29 }
  0x4d   : > { %s1491_s17 = sshra.s32 %s492_s27, 4  ;;  %s1498_s0 = scalar_lea.hbm %s1968_s1, 64  ;;  %s1492_s17 = int_to_ptr.hbm [resolvable:$true] %s1491_s17 }
  0x4e   : > { %s1493_s3 = scalar_lea.hbm %s1492_s17, 32  ;;  %p1499_p11 = scmp.lt.s32.totalorder %s1492_s17, %s1968_s1 }
  0x4f   : > { %p1494_p8 = scmp.ne.s32.totalorder %s1492_s17, %s1493_s3  ;;  %p1500_p13 = scmp.lt.s32.totalorder %s1498_s0, %s1493_s3 }
  0x51   : > { %p1496_p4 = pnand %p1494_p8, %p1465_p9  ;;  %p1501_p0 = por %p1500_p13, %p1499_p11 }
  0x53   : > { %p1497_p10 = pneg %p1496_p4 }
  0x55   : > { %p1502_p2 = pnand %p1501_p0, %p1497_p10 }
  0x57   : > { %1505 = shalt.err (!%p1502_p2)
}
  0x58   : > { %1217 = dma.hbm_to_vmem [thread:$0]  (!%p1816_p7), %s492_s27, 512, %s494_s29, %s482_s9, %s2016_s19, %s2016_s19, %s2015_s2  }
  0x59   : > { %505 = sbr.rel (%p1716_p3) target bundleno = 1229 (0x4cd), region = 72  ;;  %s1858_s24 = sand.u32 (!%p1716_p3), 1, %s1599_s26  }
  0x5a   : > { %s1138_s23 = sshll.u32 (!%p1716_p3), %s1858_s24, 5  ;;  %s508_s0 = scalar_lea.sflag (!%p1716_p3), [#allocation3], %s1858_s24 }
  0x5b   : > { %s1862_s14 = scalar_lea.vmem (!%p1716_p3), [#allocation2], %s1138_s23 }
  0x5e   : > { %1566 = dma.done.wait (%p1792_p12), %s508_s0, 512  }
  0x5f   : > { %1568 = vsyncadd (%p1792_p12), %s508_s0, 4294966784  ;;  %s517_s7 = sand.u32 1, %s1711_s15   ;;  %s521_s16 = scalar_lea.vmem [#allocation5], %s1138_s23 }
  0x60   : > { %s518_s27 = scalar_lea.sflag [#allocation6], %s517_s7 }
  0x61   : > { %1570 = dma.done.wait (%p1792_p12), %s518_s27, 512  }
  0x62   : > { %1572 = vsyncadd (%p1792_p12), %s518_s27, 4294966784 }
  0x63   : > { %1574 = dma.done.wait (%p56_p1), [#allocation6], 128  }
  0x64   : > { %1576 = vsyncadd (%p56_p1), [#allocation6], 4294967168 }
  0x65   : > { %1578 = dma.done.wait (%p56_p1), [#allocation9], 4096  }
  0x66   : > { %1580 = vsyncadd (%p56_p1), [#allocation9], 4294963200 }
  0x67   : > { %1582 = dma.done.wait (%p56_p1), [#allocation12], 4096  }
  0x68   : > { %1584 = vsyncadd (%p56_p1), [#allocation12], 4294963200 }
  0x69   : > { %1586 = dma.done.wait (%p56_p1), [#allocation15], 2048  }
  0x6a   : > { %1588 = vsyncadd (%p56_p1), [#allocation15], 4294965248  ;;  %v607_v0 = vld [vmem:[%s521_s16 + $0x18] sm:$0xff]  ;;  %v606_v1 = vld [vmem:[%s521_s16 + $0x10] sm:$0xff]  ;;  %vm608_vm0 = vcmask 261120   ;;  %s1146_s17 = sshll.u32 %s1858_s24, 3 }
  0x6b   : > { %633 = vmatpush.msra.mxu0 %v607_v0  ;;  %v605_v2 = vld [vmem:[%s521_s16 + $0x8] sm:$0xff]  ;;  %v665_v3 = vld [vmem:[#allocation8 + $0x78] sm:$0xff]  ;;  %v664_v4 = vld [vmem:[#allocation8 + $0x70] sm:$0xff]  ;;  %s1157_s3 = sshll.u32 %s1711_s15, 3  ;;  %s599_s7 = scalar_lea.vmem [#allocation16], %s1146_s17 }
  0x6c   : > { %670 = vmatpush.msra.mxu1 %v665_v3  ;;  %v604_v5 = vld [vmem:[%s521_s16] sm:$0xff]  ;;  %v663_v6 = vld [vmem:[#allocation8 + $0x68] sm:$0xff]  ;;  %v662_v8 = vld [vmem:[#allocation8 + $0x60] sm:$0xff]  ;;  %s967_s5 = scalar_lea.hbm %s1980_s13, %s1157_s3  ;;  %s969_s27 = sshll.u32 %s599_s7, 4  ;;  %s970_s27 = int_to_ptr.vmem [resolvable:$true] %s969_s27 }
  0x6d   : > { %634 = vmatpush.msra.mxu0 %v606_v1  ;;  %v1890_v7 = vld [vmem:[%s1862_s14] sm:$0xff]  ;;  %v660_v10 = vld [vmem:[#allocation8 + $0x50] sm:$0xff]  ;;  %v659_v11 = vld [vmem:[#allocation8 + $0x48] sm:$0xff]  ;;  %s971_s16 = sshll.u32 %s967_s5, 4  ;;  %s957_s12 = scalar_lea.sflag [#allocation4], %s1858_s24  ;;  %s972_s16 = int_to_ptr.hbm [resolvable:$true] %s971_s16 }
  0x6e   : > { %671 = vmatpush.msra.mxu1 %v664_v4  ;;  %v661_v9 = vld [vmem:[#allocation8 + $0x58] sm:$0xff]  ;;  %v1895_v12 = vld [vmem:[%s1862_s14 + $0x8] sm:$0xff]  ;;  %v656_v15 = vld [vmem:[#allocation8 + $0x30] sm:$0xff]  ;;  %s1535_s21 = sshra.s32 %s972_s16, 4  ;;  %s1541_s18 = scalar_lea.hbm %s1980_s13, 16  ;;  %s1536_s21 = int_to_ptr.hbm [resolvable:$true] %s1535_s21 }
  0x6f   : > { %635 = vmatpush.msra.mxu0 %v605_v2  ;;  %v658_v13 = vld [vmem:[#allocation8 + $0x40] sm:$0xff]  ;;  %v657_v14 = vld [vmem:[#allocation8 + $0x38] sm:$0xff]  ;;  %v655_v16 = vld [vmem:[#allocation8 + $0x28] sm:$0xff]  ;;  %s1537_s15 = scalar_lea.hbm %s1536_s21, 8  ;;  %p1542_p7 = scmp.lt.s32.totalorder %s1536_s21, %s1980_s13 }
  0x70   : > { %672 = vmatpush.msra.mxu1 %v663_v6  ;;  %v1900_v17 = vld [vmem:[%s1862_s14 + $0x10] sm:$0xff]  ;;  %v654_v18 = vld [vmem:[#allocation8 + $0x20] sm:$0xff]  ;;  %v653_v19 = vld [vmem:[#allocation8 + $0x18] sm:$0xff]  ;;  %p1538_p1 = scmp.ne.s32.totalorder %s1536_s21, %s1537_s15  ;;  %p1543_p9 = scmp.lt.s32.totalorder %s1541_s18, %s1537_s15 }
  0x71   : > { %636 = vmatpush.msra.mxu0 %v604_v5  ;;  %v652_v20 = vld [vmem:[#allocation8 + $0x10] sm:$0xff]  ;;  %v651_v21 = vld [vmem:[#allocation8 + $0x8] sm:$0xff]  ;;  %v650_v23 = vld [vmem:[#allocation8] sm:$0xff] }
  0x72   : > { %1147 = vmatmul.msk.f32.vlgmr.msra.gmra.mxu0 %vm608_vm0, %v1890_v7  ;;  %673 = vmatpush.msra.mxu1 %v662_v8  ;;  %v1905_v22 = vld [vmem:[%s1862_s14 + $0x18] sm:$0xff]  ;;  %v718_v24 = vld [vmem:[#allocation10 + $0x78] sm:$0xff]  ;;  %v716_v26 = vld [vmem:[#allocation10 + $0x68] sm:$0xff]  ;;  %s2017_s14 = sld [smem:[#allocation35_spill]]  ;;  %p1539_p3 = pnand %p1538_p1, %p1799_p5 }
  0x73   : > { %v717_v25 = vld [vmem:[#allocation10 + $0x70] sm:$0xff]  ;;  %723 = vmatpush.msra.mxu2 %v718_v24  ;;  %v715_v27 = vld [vmem:[#allocation10 + $0x60] sm:$0xff]  ;;  %v714_v28 = vld [vmem:[#allocation10 + $0x58] sm:$0xff]  ;;  %p1544_p8 = por %p1543_p9, %p1542_p7 }
  0x74   : > { %674 = vmatpush.msra.mxu1 %v661_v9  ;;  %v713_v30 = vld [vmem:[#allocation10 + $0x50] sm:$0xff]  ;;  %v712_v31 = vld [vmem:[#allocation10 + $0x48] sm:$0xff]  ;;  %v711_v32 = vld [vmem:[#allocation10 + $0x40] sm:$0xff]  ;;  %p1540_p12 = pneg %p1539_p3 }
  0x75   : > { %724 = vmatpush.msra.mxu2 %v717_v25  ;;  %v710_v33 = vld [vmem:[#allocation10 + $0x38] sm:$0xff]  ;;  %v709_v35 = vld [vmem:[#allocation10 + $0x30] sm:$0xff]  ;;  %v708_v36 = vld [vmem:[#allocation10 + $0x28] sm:$0xff] }
  0x76   : > { %675 = vmatpush.msra.mxu1 %v660_v10  ;;  %v707_v37 = vld [vmem:[#allocation10 + $0x20] sm:$0xff]  ;;  %v706_v38 = vld [vmem:[#allocation10 + $0x18] sm:$0xff]  ;;  %v705_v41 = vld [vmem:[#allocation10 + $0x10] sm:$0xff]  ;;  %p1545_p4 = pnand %p1544_p8, %p1540_p12 }
  0x77   : > { %725 = vmatpush.msra.mxu2 %v716_v26  ;;  %v704_v42 = vld [vmem:[#allocation10 + $0x8] sm:$0xff]  ;;  %v703_v43 = vld [vmem:[#allocation10] sm:$0xff]  ;;  %v1276_v44 = vld [vmem:[%s1971_s4] ss:$0 sm:$0xff] }
  0x78   : > { %676 = vmatpush.msra.mxu1 %v659_v11  ;;  %v1277_v60 = vld [vmem:[%s1973_s6] ss:$0 sm:$0xff]  ;;  %v799_v3 = vld [vmem:[#allocation11 + $0x70] sm:$0xff]  ;;  %v798_v6 = vld [vmem:[#allocation11 + $0x68] sm:$0xff] }
  0x79   : > { %726 = vmatpush.msra.mxu2 %v715_v27  ;;  %v800_v2 = vld [vmem:[#allocation11 + $0x78] sm:$0xff]  ;;  %v797_v9 = vld [vmem:[#allocation11 + $0x60] sm:$0xff]  ;;  %v852_v25 = vld [vmem:[#allocation13 + $0x70] sm:$0xff] }
  0x7a   : > { %1148 = vmatmul.msk.f32.gmra.mxu0 %vm608_vm0, %v1895_v12  ;;  %677 = vmatpush.msra.mxu1 %v658_v13  ;;  %v796_v11 = vld [vmem:[#allocation11 + $0x58] sm:$0xff]  ;;  %v795_v13 = vld [vmem:[#allocation11 + $0x50] sm:$0xff]  ;;  %v851_v26 = vld [vmem:[#allocation13 + $0x68] sm:$0xff] }
  0x7b   : > { %727 = vmatpush.msra.mxu2 %v714_v28  ;;  %805 = vmatpush.msrb.mxu0 %v800_v2  ;;  %v853_v24 = vld [vmem:[#allocation13 + $0x78] sm:$0xff]  ;;  %v850_v27 = vld [vmem:[#allocation13 + $0x60] sm:$0xff] }
  0x7c   : > { %678 = vmatpush.msra.mxu1 %v657_v14  ;;  %v794_v14 = vld [vmem:[#allocation11 + $0x48] sm:$0xff]  ;;  %v849_v28 = vld [vmem:[#allocation13 + $0x58] sm:$0xff] }
  0x7d   : > { %728 = vmatpush.msra.mxu2 %v713_v30  ;;  %806 = vmatpush.msrb.mxu0 %v799_v3  ;;  %v847_v30 = vld [vmem:[#allocation13 + $0x48] sm:$0xff]  ;;  %v922_v2 = vld [vmem:[#allocation14 + $0x38] sm:$0xff]  ;;  %v921_v3 = vld [vmem:[#allocation14 + $0x30] sm:$0xff] }
  0x7e   : > { %679 = vmatpush.msra.mxu1 %v656_v15  ;;  %v793_v15 = vld [vmem:[#allocation11 + $0x40] sm:$0xff] }
  0x7f   : > { %729 = vmatpush.msra.mxu2 %v712_v31  ;;  %807 = vmatpush.msrb.mxu0 %v798_v6  ;;  %v846_v31 = vld [vmem:[#allocation13 + $0x40] sm:$0xff] }
  0x80   : > { %680 = vmatpush.msra.mxu1 %v655_v16  ;;  %v792_v16 = vld [vmem:[#allocation11 + $0x38] sm:$0xff] }
  0x81   : > { %730 = vmatpush.msra.mxu2 %v711_v32  ;;  %808 = vmatpush.msrb.mxu0 %v797_v9 }
  0x82   : > { %1149 = vmatmul.msk.f32.gmra.mxu0 %vm608_vm0, %v1900_v17  ;;  %681 = vmatpush.msra.mxu1 %v654_v18  ;;  %v791_v18 = vld [vmem:[#allocation11 + $0x30] sm:$0xff] }
  0x83   : > { %731 = vmatpush.msra.mxu2 %v710_v33  ;;  %809 = vmatpush.msrb.mxu0 %v796_v11  ;;  %v844_v33 = vld [vmem:[#allocation13 + $0x30] sm:$0xff]  ;;  %v918_v11 = vld [vmem:[#allocation14 + $0x18] sm:$0xff] }
  0x84   : > { %682 = vmatpush.msra.mxu1 %v653_v19  ;;  %v790_v19 = vld [vmem:[#allocation11 + $0x28] sm:$0xff] }
  0x85   : > { %732 = vmatpush.msra.mxu2 %v709_v35  ;;  %810 = vmatpush.msrb.mxu0 %v795_v13  ;;  %v842_v35 = vld [vmem:[#allocation13 + $0x20] sm:$0xff] }
  0x86   : > { %683 = vmatpush.msra.mxu1 %v652_v20  ;;  %v789_v20 = vld [vmem:[#allocation11 + $0x20] sm:$0xff] }
  0x87   : > { %733 = vmatpush.msra.mxu2 %v708_v36  ;;  %811 = vmatpush.msrb.mxu0 %v794_v14  ;;  %v841_v36 = vld [vmem:[#allocation13 + $0x18] sm:$0xff] }
  0x88   : > { %684 = vmatpush.msra.mxu1 %v651_v21  ;;  %v788_v21 = vld [vmem:[#allocation11 + $0x18] sm:$0xff] }
  0x89   : > { %734 = vmatpush.msra.mxu2 %v707_v37  ;;  %812 = vmatpush.msrb.mxu0 %v793_v15  ;;  %v917_v15 = vld [vmem:[#allocation14 + $0x10] sm:$0xff] }
  0x8a   : > { %1150 = vmatmul.msk.f32.gmra.mxu0 %vm608_vm0, %v1905_v22  ;;  %685 = vmatpush.msra.mxu1 %v650_v23  ;;  %v786_v23 = vld [vmem:[#allocation11 + $0x8] sm:$0xff] }
  0x8b   : > { %735 = vmatpush.msra.mxu2 %v706_v38  ;;  %813 = vmatpush.msrb.mxu0 %v792_v16 }
  0x8d   : > { %736 = vmatpush.msra.mxu2 %v705_v41  ;;  %814 = vmatpush.msrb.mxu0 %v791_v18  ;;  %v838_v41 = vld [vmem:[#allocation13] sm:$0xff] }
  0x8f   : > { %737 = vmatpush.msra.mxu2 %v704_v42  ;;  %815 = vmatpush.msrb.mxu0 %v790_v19  ;;  %v1278_v42 = vld [vmem:[%s1975_s8] ss:$0 sm:$0xff]  ;;  %v916_v19 = vld [vmem:[#allocation14 + $0x8] sm:$0xff] }
  0x91   : > { %738 = vmatpush.msra.mxu2 %v703_v43  ;;  %816 = vmatpush.msrb.mxu0 %v789_v20 }
  0x93   : > { %817 = vmatpush.msrb.mxu0 %v788_v21  ;;  %v915_v21 = vld [vmem:[#allocation14] sm:$0xff] }
  0xef   : > { %v638_v29 = vpop.f32.mrf.mxu0 }
  0xf0   : > { %686 = vmatmul.f32.vlgmr.msra.gmra.mxu1 %v638_v29 }
  0xf7   : > { %v641_v34 = vpop.f32.mrf.mxu0 }
  0xf8   : > { %689 = vmatmul.f32.gmra.mxu1 %v641_v34  ;;  %v843_v34 = vld [vmem:[#allocation13 + $0x28] sm:$0xff] }
  0xff   : > { %v644_v39 = vpop.f32.mrf.mxu0 }
 0x100   : > { %692 = vmatmul.f32.gmra.mxu1 %v644_v39  ;;  %v840_v39 = vld [vmem:[#allocation13 + $0x10] sm:$0xff] }
 0x107   : > { %v647_v40 = vpop.f32.mrf.mxu0 }
 0x108   : > { %695 = vmatmul.f32.gmra.mxu1 %v647_v40  ;;  %v839_v40 = vld [vmem:[#allocation13 + $0x8] sm:$0xff] }
 0x16d   : > { %v687_v45 = vpop.f32.mrf.mxu1 }
 0x16e   : > { %v688_v46 = vadd.f32 %v1276_v44, %v687_v45 }
 0x170   : > { %v699_v47 = vmax.f32 %v688_v46, 0.0 }
 0x172   : > { %739 = vmatmul.f32.vlgmr.msra.gmra.mxu2 %v699_v47 }
 0x175   : > { %v690_v48 = vpop.f32.mrf.mxu1 }
 0x176   : > { %v691_v49 = vadd.f32 %v1276_v44, %v690_v48 }
 0x178   : > { %v700_v50 = vmax.f32 %v691_v49, 0.0 }
 0x17a   : > { %742 = vmatmul.f32.gmra.mxu2 %v700_v50 }
 0x17d   : > { %v693_v51 = vpop.f32.mrf.mxu1 }
 0x17e   : > { %v694_v52 = vadd.f32 %v1276_v44, %v693_v51 }
 0x180   : > { %v701_v53 = vmax.f32 %v694_v52, 0.0 }
 0x182   : > { %745 = vmatmul.f32.gmra.mxu2 %v701_v53 }
 0x185   : > { %v696_v54 = vpop.f32.mrf.mxu1 }
 0x186   : > { %v697_v55 = vadd.f32 %v1276_v44, %v696_v54 }
 0x188   : > { %v702_v56 = vmax.f32 %v697_v55, 0.0 }
 0x18a   : > { %748 = vmatmul.f32.gmra.mxu2 %v702_v56  ;;  %v930_v56 = vld [vmem:[#allocation14 + $0x78] sm:$0xff] }
 0x18b   : > { %935 = vmatpush.msrb.mxu2 %v930_v56 }
 0x1f5   : > { %v740_v57 = vpop.f32.mrf.mxu2 }
 0x1f6   : > { %v741_v4 = vadd.f32 %v1277_v60, %v740_v57  ;;  %v929_v57 = vld [vmem:[#allocation14 + $0x70] sm:$0xff] }
 0x1f7   : > { %936 = vmatpush.msrb.mxu2 %v929_v57 }
 0x1f8   : > { %v752_v10 = vmax.f32 %v741_v4, 0.0  ;;  %v920_v4 = vld [vmem:[#allocation14 + $0x28] sm:$0xff] }
 0x1fd   : > { %v743_v58 = vpop.f32.mrf.mxu2 }
 0x1fe   : > { %v744_v0 = vadd.f32 %v1277_v60, %v743_v58  ;;  %v928_v58 = vld [vmem:[#allocation14 + $0x68] sm:$0xff] }
 0x1ff   : > { %937 = vmatpush.msrb.mxu2 %v928_v58 }
 0x200   : > { %v753_v8 = vmax.f32 %v744_v0, 0.0 }
 0x205   : > { %v746_v59 = vpop.f32.mrf.mxu2 }
 0x206   : > { %v747_v62 = vadd.f32 %v1277_v60, %v746_v59 }
 0x208   : > { %v754_v5 = vmax.f32 %v747_v62, 0.0  ;;  %v925_v62 = vld [vmem:[#allocation14 + $0x50] sm:$0xff] }
 0x20d   : > { %v749_v61 = vpop.f32.mrf.mxu2 }
 0x20e   : > { %v750_v63 = vadd.f32 %v1277_v60, %v749_v61  ;;  %v927_v60 = vld [vmem:[#allocation14 + $0x60] sm:$0xff]  ;;  %v926_v61 = vld [vmem:[#allocation14 + $0x58] sm:$0xff] }
 0x20f   : > { %938 = vmatpush.msrb.mxu2 %v927_v60 }
 0x210   : > { %v755_v1 = vmax.f32 %v750_v63, 0.0  ;;  %v924_v63 = vld [vmem:[#allocation14 + $0x48] sm:$0xff] }
 0x211   : > { %939 = vmatpush.msrb.mxu2 %v926_v61 }
 0x212   : > { %768 = vmatpush.msra.mxu3 %v755_v1  ;;  %v923_v1 = vld [vmem:[#allocation14 + $0x40] sm:$0xff] }
 0x213   : > { %940 = vmatpush.msrb.mxu2 %v925_v62 }
 0x214   : > { %769 = vmatpush.msra.mxu3 %v754_v5  ;;  %v1279_v5 = vld [vmem:[%s1977_s10] ss:$0 sm:$0xff] }
 0x215   : > { %941 = vmatpush.msrb.mxu2 %v924_v63 }
 0x216   : > { %770 = vmatpush.msra.mxu3 %v753_v8  ;;  %v919_v8 = vld [vmem:[#allocation14 + $0x20] sm:$0xff] }
 0x217   : > { %942 = vmatpush.msrb.mxu2 %v923_v1 }
 0x218   : > { %771 = vmatpush.msra.mxu3 %v752_v10 }
 0x219   : > { %1151 = vmatmul.msk.f32.vlgmr.msra.gmra.mxu3 %vm608_vm0, %v1890_v7  ;;  %v787_v7 = vld [vmem:[#allocation11 + $0x10] sm:$0xff]  ;;  %943 = vmatpush.msrb.mxu2 %v922_v2 }
 0x21a   : > { %818 = vmatpush.msrb.mxu0 %v787_v7  ;;  %858 = vmatpush.msrb.mxu3 %v853_v24  ;;  %v1280_v24 = vld [vmem:[%s2017_s14] ss:$0 sm:$0xff] }
 0x21b   : > { %944 = vmatpush.msrb.mxu2 %v921_v3 }
 0x21c   : > { %819 = vmatpush.msrb.mxu0 %v786_v23  ;;  %859 = vmatpush.msrb.mxu3 %v852_v25  ;;  %v891_v23 = vld [vmem:[#allocation7] sm:$0xff] }
 0x21d   : > { %945 = vmatpush.msrb.mxu2 %v920_v4 }
 0x21e   : > { %860 = vmatpush.msrb.mxu3 %v851_v26 }
 0x21f   : > { %946 = vmatpush.msrb.mxu2 %v919_v8 }
 0x220   : > { %861 = vmatpush.msrb.mxu3 %v850_v27 }
 0x221   : > { %1152 = vmatmul.msk.f32.gmra.mxu3 %vm608_vm0, %v1895_v12  ;;  %v785_v12 = vld [vmem:[#allocation11] sm:$0xff]  ;;  %947 = vmatpush.msrb.mxu2 %v918_v11 }
 0x222   : > { %820 = vmatpush.msrb.mxu0 %v785_v12  ;;  %862 = vmatpush.msrb.mxu3 %v849_v28 }
 0x223   : > { %948 = vmatpush.msrb.mxu2 %v917_v15 }
 0x225   : > { %949 = vmatpush.msrb.mxu2 %v916_v19 }
 0x227   : > { %950 = vmatpush.msrb.mxu2 %v915_v21 }
 0x229   : > { %1153 = vmatmul.msk.f32.gmra.mxu3 %vm608_vm0, %v1900_v17  ;;  %v848_v17 = vld [vmem:[#allocation13 + $0x50] sm:$0xff] }
 0x22a   : > { %863 = vmatpush.msrb.mxu3 %v848_v17 }
 0x22c   : > { %864 = vmatpush.msrb.mxu3 %v847_v30 }
 0x22e   : > { %865 = vmatpush.msrb.mxu3 %v846_v31 }
 0x231   : > { %1154 = vmatmul.msk.f32.gmra.mxu3 %vm608_vm0, %v1905_v22  ;;  %v845_v22 = vld [vmem:[#allocation13 + $0x38] sm:$0xff] }
 0x232   : > { %866 = vmatpush.msrb.mxu3 %v845_v22 }
 0x234   : > { %867 = vmatpush.msrb.mxu3 %v844_v33 }
 0x236   : > { %868 = vmatpush.msrb.mxu3 %v843_v34 }
 0x238   : > { %869 = vmatpush.msrb.mxu3 %v842_v35 }
 0x23a   : > { %870 = vmatpush.msrb.mxu3 %v841_v36 }
 0x23c   : > { %871 = vmatpush.msrb.mxu3 %v840_v39 }
 0x23e   : > { %872 = vmatpush.msrb.mxu3 %v839_v40 }
 0x240   : > { %873 = vmatpush.msrb.mxu3 %v838_v41 }
 0x29c   : > { %v773_v29 = vpop.f32.mrf.mxu3 }
 0x29d   : > { %821 = vmatmul.f32.vlgmr.msrb.gmra.mxu0 %v773_v29 }
 0x2a4   : > { %v776_v32 = vpop.f32.mrf.mxu3 }
 0x2a5   : > { %824 = vmatmul.f32.gmra.mxu0 %v776_v32 }
 0x2ac   : > { %v779_v37 = vpop.f32.mrf.mxu3 }
 0x2ad   : > { %827 = vmatmul.f32.gmra.mxu0 %v779_v37 }
 0x2b4   : > { %v782_v38 = vpop.f32.mrf.mxu3 }
 0x2b5   : > { %830 = vmatmul.f32.gmra.mxu0 %v782_v38 }
 0x31a   : > { %v822_v43 = vpop.f32.mrf.mxu0 }
 0x31b   : > { %v823_v44 = vadd.f32 %v1278_v42, %v822_v43 }
 0x31d   : > { %v834_v45 = vmax.f32 %v823_v44, 0.0 }
 0x31f   : > { %874 = vmatmul.f32.vlgmr.msrb.gmra.mxu3 %v834_v45 }
 0x322   : > { %v825_v46 = vpop.f32.mrf.mxu0 }
 0x323   : > { %v826_v47 = vadd.f32 %v1278_v42, %v825_v46 }
 0x325   : > { %v835_v48 = vmax.f32 %v826_v47, 0.0 }
 0x327   : > { %877 = vmatmul.f32.gmra.mxu3 %v835_v48 }
 0x32a   : > { %v828_v49 = vpop.f32.mrf.mxu0 }
 0x32b   : > { %v829_v50 = vadd.f32 %v1278_v42, %v828_v49 }
 0x32d   : > { %v836_v51 = vmax.f32 %v829_v50, 0.0 }
 0x32f   : > { %880 = vmatmul.f32.gmra.mxu3 %v836_v51 }
 0x332   : > { %v831_v52 = vpop.f32.mrf.mxu0 }
 0x333   : > { %v832_v53 = vadd.f32 %v1278_v42, %v831_v52 }
 0x335   : > { %v837_v54 = vmax.f32 %v832_v53, 0.0 }
 0x337   : > { %883 = vmatmul.f32.gmra.mxu3 %v837_v54 }
 0x3a2   : > { %v875_v55 = vpop.f32.mrf.mxu3 }
 0x3a3   : > { %v876_v16 = vadd.f32 %v1279_v5, %v875_v55 }
 0x3a5   : > { %v887_v7 = vmax.f32 %v876_v16, 0.0 }
 0x3aa   : > { %v878_v59 = vpop.f32.mrf.mxu3 }
 0x3ab   : > { %v879_v13 = vadd.f32 %v1279_v5, %v878_v59 }
 0x3ad   : > { %v888_v20 = vmax.f32 %v879_v13, 0.0 }
 0x3b2   : > { %v881_v0 = vpop.f32.mrf.mxu3 }
 0x3b3   : > { %v882_v9 = vadd.f32 %v1279_v5, %v881_v0 }
 0x3b5   : > { %v889_v18 = vmax.f32 %v882_v9, 0.0 }
 0x3ba   : > { %v884_v6 = vpop.f32.mrf.mxu3 }
 0x3bb   : > { %v885_v10 = vadd.f32 %v1279_v5, %v884_v6 }
 0x3bd   : > { %v890_v14 = vmax.f32 %v885_v10, 0.0 }
 0x3bf   : > { %907 = vmatpush.msrb.mxu1 %v890_v14 }
 0x3c1   : > { %908 = vmatpush.msrb.mxu1 %v889_v18 }
 0x3c3   : > { %909 = vmatpush.msrb.mxu1 %v888_v20 }
 0x3c5   : > { %910 = vmatpush.msrb.mxu1 %v887_v7 }
 0x3c6   : > { %1155 = vmatmul.msk.f32.vlgmr.msrb.gmra.mxu1 %vm608_vm0, %v891_v23 }
 0x443   : > { %v912_v12 = vpop.f32.mrf.mxu1 }
 0x444   : > { %951 = vmatmul.f32.vlgmr.msrb.gmra.mxu2 %v912_v12 }
 0x4c7   : > { %v952_v25 = vpop.f32.mrf.mxu2 }
 0x4c8   : > { %v953_v26 = vadd.f32 %v1280_v24, %v952_v25 }
 0x4ca   : > { %955 = vst [vmem:[%s599_s7] sm:$0xff] %v953_v26 }
 0x4cb   : > { %1548 = shalt.err (!%p1545_p4)
}
 0x4cc   : > { %1190 = dma.vmem_to_hbm [thread:$0]  (%p1799_p5), %s970_s27, 128, %s972_s16, %s957_s12  }
 0x4cd PF: > { %s983_s9 = sand.u32 1, %s1595_s25   ;;  %p2019_p10 = scmp.ge.s32.totalorder %s1607_s28, 2 }
 0x4ce   : > { %s984_s17 = scalar_lea.sflag [#allocation4], %s983_s9 }
 0x4cf   : > { %p1219_p11 = pnand %p2019_p10, %p1803_p6 }
 0x4d1   : > { %p1220_p13 = pneg %p1219_p11 }
 0x4d3   : > { %1590 = dma.done.wait (%p1220_p13), %s984_s17, 128  }
 0x4d4   : > { %1592 = vsyncadd (%p1220_p13), %s984_s17, 4294967168  ;;  %s2020_s28 = sld [smem:[#allocation25_spill]]  ;;  %s2023_s25 = smov %s1599_s26 }
 0x4d5   : > { %s2021_s3 = sld [smem:[#allocation24_spill]] }
 0x4d6   : > { %s2022_s27 = sld [smem:[#allocation26_spill]] }
 0x4da   : > { %p32_p0 = scmp.ge.s32.totalorder %s2020_s28, 4  }
 0x4db   : > { %s2024_s26 = smov %s2021_s3 }
 0x4dc   :  { %34 = sbr.rel (!%p32_p0) target bundleno = 19 (0x13), region = 154 }
 0x4e1   :  { %990 = vsyncpa [#allocation3], 1 }
 0x4e2   :  { %992 = vsyncpa [#allocation3 + $0x1], 1 }
 0x4e3   :  { %993 = vsyncpa [#allocation6], 1 }
 0x4e4   :  { %995 = vsyncpa [#allocation6 + $0x1], 1 }
 0x4e5   :  { %996 = vsyncpa [#allocation9], 1 }
 0x4e6   :  { %997 = vsyncpa [#allocation12], 1 }
 0x4e7   :  { %998 = vsyncpa [#allocation15], 1 }
 0x4e8   :  { %999 = vsyncpa [#allocation4], 1 }
 0x4e9   :  { %1001 = vsyncpa [#allocation4 + $0x1], 1 }

</bundles_post_ra>
